<compile_context>
chip_gen: v6e
topology: v6e:2x2x1
jax: 0.10.0
libtpu: 0.0.40
codegen_flags: <defaults>
</compile_context>

<pallas_src>
import functools
import math

import jax
import jax.numpy as jnp
from jax import lax
from jax.experimental import pallas as pl
from jax.experimental.pallas import tpu as pltpu


def _round_up(x, m):
    return (x + m - 1) // m * m


# Routing thresholds / budgets.
_ONEHOT_MAX_VOCAB = 1024                   # beyond this the one-hot matmul flops are wasteful
_ONEHOT_MAX_TABLE_BYTES = 4 * 1024 * 1024  # resident table cap (x2 buffers still tiny)
_VMEM_LIMIT_BYTES = 40 * 1024 * 1024       # safe on v5e/v6e (128 MiB) and v7x (64 MiB/TC)


# ---------------------------------------------------------------------------
# Path 1: small vocab -> table fully VMEM-resident, gather via one-hot matmul.
# ---------------------------------------------------------------------------
def _onehot_kernel(ids_ref, tab_ref, out_ref, *, scale):
    """One grid step: gather G rows from the VMEM-resident table.

    (G, V) x (V, D) one-hot matmul on the otherwise-idle MXU; with
    Precision.HIGHEST the 0/1 one-hot reproduces the f32 rows exactly.
    Single vocab tile -> direct store, no accumulator init / RMW.
    """
    ids = ids_ref[...]                                    # (G, 1) int32
    g = ids.shape[0]
    v = tab_ref.shape[0]
    cols = lax.broadcasted_iota(jnp.int32, (g, v), 1)     # (G, V)
    onehot = (cols == ids).astype(tab_ref.dtype)          # broadcast against (G, 1)
    rows = jnp.dot(
        onehot,
        tab_ref[...],
        preferred_element_type=jnp.float32,
        precision=lax.Precision.HIGHEST,
    )
    out_ref[...] = (rows * scale).astype(out_ref.dtype)


# ---------------------------------------------------------------------------
# Path 2: large vocab -> table stays in HBM, per-row DMA gather per token tile.
# ---------------------------------------------------------------------------
def _gather_kernel(ids_ref, tab_hbm, out_ref, rows_ref, sem, *, scale, g_tile):
    """One grid step: DMA the G needed embedding rows HBM -> VMEM, scale, store.

    ids_ref:  (N_pad,) int32, scalar-prefetched into SMEM
    tab_hbm:  (vocab, D) raw HBM ref (memory_space=pl.ANY)
    rows_ref: (G, D) VMEM scratch
    sem:      single DMA semaphore shared by all G equal-size copies
    """
    base = pl.program_id(0) * g_tile

    def _issue(g, carry):
        tok = ids_ref[base + g]
        pltpu.make_async_copy(
            tab_hbm.at[pl.ds(tok, 1), :],
            rows_ref.at[pl.ds(g, 1), :],
            sem,
        ).start()
        return carry

    lax.fori_loop(0, g_tile, _issue, 0, unroll=8)

    def _wait(g, carry):
        tok = ids_ref[base + g]
        pltpu.make_async_copy(
            tab_hbm.at[pl.ds(tok, 1), :],
            rows_ref.at[pl.ds(g, 1), :],
            sem,
        ).wait()
        return carry

    # All copies signal the same semaphore with identical sizes, so G waits
    # guarantee every row has landed before rows_ref is read below.
    lax.fori_loop(0, g_tile, _wait, 0, unroll=8)

    out_ref[...] = (rows_ref[...] * scale).astype(out_ref.dtype)


# ---------------------------------------------------------------------------
# Wrapper: Embedding.forward(x) == table[x] * sqrt(d_model)
# ---------------------------------------------------------------------------
def embedding_forward(ids, table, d_model=None):
    B, S = ids.shape
    vocab, D = table.shape
    if d_model is None:
        d_model = D
    assert D == d_model
    N = B * S
    scale = float(math.sqrt(d_model))
    itemsize = table.dtype.itemsize

    # Token tiling: G tokens per grid step, dense lane-aligned (G, D) out tiles.
    G = min(512, _round_up(N, 8))
    N_pad = _round_up(N, G)
    num_tiles = N_pad // G

    flat_ids = ids.reshape(N).astype(jnp.int32)
    if N_pad != N:
        # Padded tokens gather row 0; their rows are sliced off below.
        flat_ids = jnp.pad(flat_ids, (0, N_pad - N))

    use_resident = (vocab <= _ONEHOT_MAX_VOCAB
                    and vocab * D * itemsize <= _ONEHOT_MAX_TABLE_BYTES)

    compiler_params = pltpu.CompilerParams(
        dimension_semantics=("parallel",),      # token tiles across both TCs on v7x
        vmem_limit_bytes=_VMEM_LIMIT_BYTES,
    )

    if use_resident:
        ids2d = flat_ids.reshape(N_pad, 1)
        kernel = functools.partial(_onehot_kernel, scale=scale)
        out = pl.pallas_call(
            kernel,
            out_shape=jax.ShapeDtypeStruct((N_pad, D), table.dtype),
            grid_spec=pltpu.PrefetchScalarGridSpec(
                num_scalar_prefetch=0,
                grid=(num_tiles,),
                in_specs=[
                    pl.BlockSpec((G, 1), lambda i: (i, 0)),       # token ids
                    # Constant block index -> table DMA'd to VMEM once, resident.
                    pl.BlockSpec((vocab, D), lambda i: (0, 0)),
                ],
                out_specs=pl.BlockSpec((G, D), lambda i: (i, 0)),
            ),
            compiler_params=compiler_params,
            cost_estimate=pl.CostEstimate(
                flops=2 * N_pad * vocab * D,
                transcendentals=0,
                bytes_accessed=(N_pad * 4
                                + vocab * D * itemsize          # table read once
                                + N_pad * D * itemsize),        # output write
            ),
        )(ids2d, table)
    else:
        # TODO(synk): for N beyond a few hundred thousand tokens the flat id
        # vector should itself be tiled instead of fully scalar-prefetched.
        kernel = functools.partial(_gather_kernel, scale=scale, g_tile=G)
        out = pl.pallas_call(
            kernel,
            out_shape=jax.ShapeDtypeStruct((N_pad, D), table.dtype),
            grid_spec=pltpu.PrefetchScalarGridSpec(
                num_scalar_prefetch=1,                            # flat ids -> SMEM
                grid=(num_tiles,),
                in_specs=[pl.BlockSpec(memory_space=pl.ANY)],     # table stays in HBM
                out_specs=pl.BlockSpec((G, D), lambda i, ids: (i, 0)),
                scratch_shapes=[
                    pltpu.VMEM((G, D), table.dtype),
                    pltpu.SemaphoreType.DMA,
                ],
            ),
            compiler_params=compiler_params,
            cost_estimate=pl.CostEstimate(
                flops=N_pad * D,
                transcendentals=0,
                bytes_accessed=(N_pad * 4
                                + N_pad * D * itemsize            # gathered rows read
                                + N_pad * D * itemsize),          # output write
            ),
        )(flat_ids, table)

    return out[:N].reshape(B, S, D)


if __name__ == "__main__":
    key = jax.random.PRNGKey(0)
    k_w1, k_x1, k_w2, k_x2 = jax.random.split(key, 4)

    # ---- Case 1: module-spec shapes (small vocab -> VMEM-resident path) ----
    vocab_num, d_model, batch, seq = 50, 128, 2, 8
    emb_weight = jax.random.normal(k_w1, (vocab_num, d_model), dtype=jnp.float32)
    x = jax.random.randint(k_x1, (batch, seq), 0, vocab_num, dtype=jnp.int32)

    out = jax.block_until_ready(embedding_forward(x, emb_weight, d_model))
    ref = emb_weight[x] * math.sqrt(d_model)
    assert out.shape == (batch, seq, d_model)
    assert out.dtype == jnp.float32
    assert jnp.allclose(out, ref, atol=1e-4, rtol=1e-4)

    # ---- Case 2: larger vocab -> HBM per-row DMA gather path ----
    vocab2, d2, b2, s2 = 4096, 128, 2, 16
    w2 = jax.random.normal(k_w2, (vocab2, d2), dtype=jnp.float32)
    x2 = jax.random.randint(k_x2, (b2, s2), 0, vocab2, dtype=jnp.int32)

    out2 = jax.block_until_ready(embedding_forward(x2, w2, d2))
    ref2 = w2[x2] * math.sqrt(d2)
    assert out2.shape == (b2, s2, d2)
    assert jnp.allclose(out2, ref2, atol=1e-4, rtol=1e-4)

    print("KERNEL_OK")
</pallas_src>

<mosaic_0001>
module attributes {stable_mosaic.version = 11 : i64} {
  func.func @_onehot_kernel(%arg0: i32, %arg1: memref<16x1xi32, #tpu.memory_space<vmem>>, %arg2: memref<50x128xf32, #tpu.memory_space<vmem>>, %arg3: memref<16x128xf32, #tpu.memory_space<vmem>>) attributes {dimension_semantics = [#tpu.dimension_semantics<parallel>], iteration_bounds = array<i64: 1>, scalar_prefetch = 0 : i64, scratch_operands = 0 : i64, tpu.core_type = #tpu.core_type<tc>, window_params = [{transform_indices = @transform_0, window_bounds = array<i64: 16, 1>}, {pipeline_mode = #tpu.pipeline_mode<synchronous>, transform_indices = @transform_1, window_bounds = array<i64: 50, 128>}, {transform_indices = @transform_2, window_bounds = array<i64: 16, 128>}]} {
    %c0 = arith.constant 0 : index
    %c0_0 = arith.constant 0 : index
    %0 = vector.load %arg1[%c0, %c0_0] : memref<16x1xi32, #tpu.memory_space<vmem>>, vector<16x1xi32>
    %1 = tpu.iota {dimensions = array<i32: 1>} : vector<16x50xi32>
    %2 = vector.broadcast %0 : vector<16x1xi32> to vector<16x50xi32>
    %3 = arith.cmpi eq, %1, %2 : vector<16x50xi32>
    %4 = arith.extui %3 : vector<16x50xi1> to vector<16x50xi32>
    %5 = arith.sitofp %4 : vector<16x50xi32> to vector<16x50xf32>
    %c0_1 = arith.constant 0 : index
    %c0_2 = arith.constant 0 : index
    %6 = vector.load %arg2[%c0_1, %c0_2] : memref<50x128xf32, #tpu.memory_space<vmem>>, vector<50x128xf32>
    %cst = arith.constant dense<0.000000e+00> : vector<16x128xf32>
    %7 = tpu.matmul %5, %6, %cst {dimension_numbers = #tpu.dot_dimension_numbers<[1], [0], [0], [1], [0, 0, 1, 1], [], []>, precision = #tpu.contract_precision<fp32>} : vector<16x50xf32>, vector<50x128xf32>, vector<16x128xf32> -> vector<16x128xf32>
    %cst_3 = arith.constant 11.3137083 : f32
    %8 = vector.broadcast %cst_3 : f32 to vector<16x128xf32>
    %9 = arith.mulf %7, %8 : vector<16x128xf32>
    %c0_4 = arith.constant 0 : index
    %c0_5 = arith.constant 0 : index
    %10 = vector.load %arg3[%c0_4, %c0_5] : memref<16x128xf32, #tpu.memory_space<vmem>>, vector<16x128xf32>
    tpu.vector_store %arg3[%c0_4, %c0_5], %9 {strides = array<i32>} : memref<16x128xf32, #tpu.memory_space<vmem>>, vector<16x128xf32>,
    return
  }
  func.func @transform_0(%arg0: i32) -> (i32, i32) {
    %c0_i32 = arith.constant 0 : i32
    %c0_i32_0 = arith.constant 0 : i32
    return %arg0, %c0_i32 : i32, i32
  }
  func.func @transform_1(%arg0: i32) -> (i32, i32) {
    %c0_i32 = arith.constant 0 : i32
    %c0_i32_0 = arith.constant 0 : i32
    %c0_i32_1 = arith.constant 0 : i32
    return %c0_i32, %c0_i32_0 : i32, i32
  }
  func.func @transform_2(%arg0: i32) -> (i32, i32) {
    %c0_i32 = arith.constant 0 : i32
    %c0_i32_0 = arith.constant 0 : i32
    return %arg0, %c0_i32 : i32, i32
  }
}

</mosaic_0001>

<bundles_post_ra>
// kernel: tpu_custom_call.1
= control target key start
LH: loop header
LB: loop body
LE: loop exit
PB: predicated region body
PF: predicated region fallthrough
CT: control target
= control target key end

     0   :  { %7 = vsyncpa [#allocation3], 0  ;;  %s1056_s0 = inlined_call_operand.vmem [shape: s32[16,1], index: 0, kind: input, shape index: {}]   ;;  %s1057_s1 = inlined_call_operand.hbm [shape: f32[50,128], index: 1, kind: input, shape index: {}]   ;;  %s1058_s2 = inlined_call_operand.hbm [shape: f32[16,128], index: 2, kind: output, shape index: {}]  }
   0x1   :  { %8 = vsyncpa [#allocation4], 0  ;;  %s863_s9 = smov [#allocation2]  }
   0x2   :  { %s16_s10 = sshll.u32 %s863_s9, 4  ;;  %s17_s10 = int_to_ptr.vmem [resolvable:$true] %s16_s10 }
   0x3   :  { %s827_s11 = scalar_lea.vmem %s17_s10, 896  ;;  %p832_p1 = scmp.lt.s32.totalorder %s17_s10, %s17_s10 }
   0x4   :  { %p828_p0 = scmp.ne.s32.totalorder %s17_s10, %s827_s11  ;;  %p833_p2 = scmp.lt.s32.totalorder %s827_s11, %s827_s11 }
   0x6   :  { %p834_p3 = por %p833_p2, %p832_p1 }
   0x8   :  { %p835_p4 = pnand %p834_p3, %p828_p0 }
   0xa   :  { %838 = shalt.err (!%p835_p4)
}
   0xb   :  { %s864_s12 = smov 128   ;;  %s865_s13 = smov 8  }
   0xc   :  { %22 = dma.hbm_to_vmem [thread:$0]  %s1057_s1, 896, %s17_s10, [#allocation3], %s864_s12, %s864_s12, %s865_s13  }
   0xd   :  { %859 = dma.done.wait [#allocation3], 896  }
   0xe   :  { %860 = vsyncadd [#allocation3], 4294966400  ;;  %v866_v0 = vmov 0   ;;  %vm56_vm0 = vcmask 1041408   ;;  %v26_v1 = vld [vmem:[%s1056_s0] sm:$0xff]  ;;  %v27_v2 = vld [vmem:[%s1056_s0 + $0x8] sm:$0xff]  ;;  %v28_v46 = vlaneseq }
   0xf   :  { %818 = vset.pattern.permute.xlu0 %v866_v0  ;;  %v48_v3 = vld [vmem:[#allocation2 + $0x30] sm:$0x3]  ;;  %v47_v5 = vld [vmem:[#allocation2 + $0x28] sm:$0xff]  ;;  %v46_v6 = vld [vmem:[#allocation2 + $0x20] sm:$0xff]  ;;  %vm49_vm1 = vcmask 408576   ;;  %v867_v49 = vmov 0.0  }
  0x10   :  { %31 = vperm.xlu0 %818, %v26_v1   ;;  %v58_v4 = vsel %vm56_vm0, %v48_v3, 0  ;;  %v45_v7 = vld [vmem:[#allocation2 + $0x18] sm:$0xff]  ;;  %v898_v9 = vand.u32 4294901760, %v47_v5  ;;  %v900_v10 = vand.u32 4294901760, %v46_v6  ;;  %v44_v12 = vld [vmem:[#allocation2 + $0x10] sm:$0xff]  ;;  %v43_v13 = vld [vmem:[#allocation2 + $0x8] sm:$0xff] }
  0x11   :  { %v896_v8 = vand.u32 4294901760, %v58_v4  ;;  %v902_v11 = vand.u32 4294901760, %v45_v7  ;;  %v904_v14 = vand.u32 4294901760, %v44_v12  ;;  %v906_v15 = vand.u32 4294901760, %v43_v13  ;;  %v42_v16 = vld [vmem:[#allocation2] sm:$0xff]  ;;  %s868_s0 = smov [#allocation5]  }
  0x12   :  { %v912_v18 = vsub.f32 %v47_v5, %v898_v9  ;;  %v915_v19 = vsub.f32 %v46_v6, %v900_v10  ;;  %v928_v23 = vand.u32 4294901760, %v42_v16  ;;  %v29_v47 = vand.u32 127, %v28_v46  ;;  %s636_s1 = sshll.u32 %s868_s0, 4  ;;  %s637_s1 = int_to_ptr.vmem [resolvable:$true] %s636_s1 }
  0x13   :  { %v909_v17 = vsub.f32 %v58_v4, %v896_v8  ;;  %v918_v20 = vsub.f32 %v45_v7, %v902_v11  ;;  %710 = vmatprep.subr.mxu0 %v896_v8  ;;  %v922_v21 = vsub.f32 %v44_v12, %v904_v14  ;;  %v926_v22 = vsub.f32 %v43_v13, %v906_v15  ;;  %s839_s20 = scalar_lea.vmem %s637_s1, 256  ;;  %p844_p6 = scmp.lt.s32.totalorder %s637_s1, %s637_s1 }
  0x14   :  { %34 = vperm.xlu0 %818, %v27_v2   ;;  %711 = vmatpush3.msra.mxu0 %v896_v8  ;;  %v934_v25 = vand.u32 4294901760, %v912_v18  ;;  %v937_v26 = vand.u32 4294901760, %v915_v19  ;;  %v954_v32 = vsub.f32 %v42_v16, %v928_v23  ;;  %p840_p5 = scmp.ne.s32.totalorder %s637_s1, %s839_s20  ;;  %p845_p7 = scmp.lt.s32.totalorder %s839_s20, %s839_s20 }
  0x15   :  { %v931_v24 = vand.u32 4294901760, %v909_v17  ;;  %v940_v27 = vand.u32 4294901760, %v918_v20  ;;  %712 = vmatprep.subr.mxu0 %v898_v9  ;;  %v944_v28 = vand.u32 4294901760, %v922_v21  ;;  %v961_v36 = vand.u32 4294901760, %v926_v22 }
  0x16   :  { %713 = vmatpush3.msra.mxu0 %v898_v9  ;;  %v181_v30 = vsub.f32 %v912_v18, %v934_v25  ;;  %v188_v31 = vsub.f32 %v915_v19, %v937_v26  ;;  %v968_v39 = vand.u32 4294901760, %v954_v32  ;;  %p846_p8 = por %p845_p7, %p844_p6 }
  0x17   :  { %v174_v29 = vsub.f32 %v909_v17, %v931_v24  ;;  %714 = vmatprep.subr.mxu0 %v900_v10  ;;  %v195_v35 = vsub.f32 %v918_v20, %v940_v27  ;;  %v202_v38 = vsub.f32 %v922_v21, %v944_v28  ;;  %v209_v41 = vsub.f32 %v926_v22, %v961_v36 }
  0x18   :  { %715 = vmatpush3.msra.mxu0 %v900_v10  ;;  %v182_v34 = vand.u32 4294901760, %v181_v30  ;;  %v189_v37 = vand.u32 4294901760, %v188_v31  ;;  %v216_v43 = vsub.f32 %v954_v32, %v968_v39  ;;  %p847_p9 = pnand %p846_p8, %p840_p5 }
  0x19   :  { %v175_v33 = vand.u32 4294901760, %v174_v29  ;;  %716 = vmatprep.subr.mxu0 %v902_v11  ;;  %v196_v40 = vand.u32 4294901760, %v195_v35  ;;  %v203_v42 = vand.u32 4294901760, %v202_v38  ;;  %v210_v44 = vand.u32 4294901760, %v209_v41 }
  0x1a   :  { %717 = vmatpush3.msra.mxu0 %v902_v11  ;;  %v217_v45 = vand.u32 4294901760, %v216_v43 }
  0x1b   :  { %727 = vmatprep.subr.mxu1 %v175_v33  ;;  %718 = vmatprep.subr.mxu0 %v904_v14 }
  0x1c   :  { %728 = vmatpush3.msra.mxu1 %v175_v33  ;;  %719 = vmatpush3.msra.mxu0 %v904_v14 }
  0x1d   :  { %729 = vmatprep.subr.mxu1 %v182_v34  ;;  %720 = vmatprep.subr.mxu0 %v906_v15 }
  0x1e   :  { %730 = vmatpush3.msra.mxu1 %v182_v34  ;;  %721 = vmatpush3.msra.mxu0 %v906_v15 }
  0x1f   :  { %731 = vmatprep.subr.mxu1 %v189_v37  ;;  %722 = vmatprep.subr.mxu0 %v928_v23 }
  0x20   :  { %732 = vmatpush3.msra.mxu1 %v189_v37  ;;  %723 = vmatpush3.msra.mxu0 %v928_v23 }
  0x21   :  { %733 = vmatprep.subr.mxu1 %v196_v40  ;;  %744 = vmatprep.subr.mxu0 %v909_v17 }
  0x22   :  { %734 = vmatpush3.msra.mxu1 %v196_v40 }
  0x23   :  { %735 = vmatprep.subr.mxu1 %v203_v42 }
  0x24   :  { %736 = vmatpush3.msra.mxu1 %v203_v42 }
  0x25   :  { %737 = vmatprep.subr.mxu1 %v210_v44 }
  0x26   :  { %738 = vmatpush3.msra.mxu1 %v210_v44 }
  0x27   :  { %739 = vmatprep.subr.mxu1 %v217_v45 }
  0x28   :  { %740 = vmatpush3.msra.mxu1 %v217_v45 }
  0x29   :  { %761 = vmatprep.subr.mxu1 %v896_v8 }
  0x8b   :  { %v32_v48 = vpop.permute.xlu0 %31 }
  0x8c   :  { %vm36_vm2 = vcmp.eq.s32.totalorder %v29_v47, %v32_v48 }
  0x8d   :  { %v648_v50 = vsel %vm36_vm2, 1.0, %v867_v49 }
  0x8e   :  { %v51_v51 = vsel %vm49_vm1, %v648_v50, 0  ;;  %741 = vmatprep.mubr.msk.f32.mxu1 %vm49_vm1, %v648_v50 }
  0x8f   :  { %v133_v52 = vsub.f32 %v51_v51, %v51_v51  ;;  %v35_v53 = vpop.permute.xlu0 %34 }
  0x90   :  { %vm37_vm3 = vcmp.eq.s32.totalorder %v29_v47, %v35_v53 }
  0x91   :  { %v984_v54 = vsel %vm37_vm3, 1.0, %v867_v49  ;;  %v134_v55 = vand.u32 4294901760, %v133_v52 }
  0x92   :  { %v54_v56 = vsel %vm49_vm1, %v984_v54, 0  ;;  %742 = vmatmul.mubr.msk.f32.vlgmr.msra.gmra.mxu1 %vm49_vm1, %v984_v54 }
  0x93   :  { %v143_v57 = vsub.f32 %v54_v56, %v54_v56  ;;  %762 = vmatpush3.msra.mxu1 %v896_v8  ;;  %775 = vmatprep.mubr.f32.mxu1 %v134_v55  ;;  %v135_v58 = vsub.f32 %v133_v52, %v134_v55 }
  0x94   :  { %763 = vmatprep.subr.mxu1 %v898_v9 }
  0x95   :  { %764 = vmatpush3.msra.mxu1 %v898_v9  ;;  %v136_v59 = vand.u32 4294901760, %v135_v58  ;;  %v144_v60 = vand.u32 4294901760, %v143_v57 }
  0x96   :  { %765 = vmatprep.subr.mxu1 %v900_v10 }
  0x97   :  { %766 = vmatpush3.msra.mxu1 %v900_v10  ;;  %724 = vmatprep.mubr.f32.mxu0 %v136_v59  ;;  %v145_v61 = vsub.f32 %v143_v57, %v144_v60 }
  0x98   :  { %767 = vmatprep.subr.mxu1 %v902_v11 }
  0x99   :  { %768 = vmatpush3.msra.mxu1 %v902_v11  ;;  %v146_v62 = vand.u32 4294901760, %v145_v61 }
  0x9a   :  { %769 = vmatprep.subr.mxu1 %v904_v14 }
  0x9b   :  { %770 = vmatpush3.msra.mxu1 %v904_v14  ;;  %725 = vmatmul.mubr.f32.vlgmr.msra.gmra.mxu0 %v146_v62 }
  0x9c   :  { %745 = vmatpush3.msra.mxu0 %v909_v17  ;;  %771 = vmatprep.subr.mxu1 %v906_v15 }
  0x9d   :  { %746 = vmatprep.subr.mxu0 %v912_v18  ;;  %758 = vmatprep.mubr.f32.mxu0 %v133_v52 }
  0x9e   :  { %772 = vmatpush3.msra.mxu1 %v906_v15  ;;  %747 = vmatpush3.msra.mxu0 %v912_v18 }
  0x9f   :  { %773 = vmatprep.subr.mxu1 %v928_v23  ;;  %748 = vmatprep.subr.mxu0 %v915_v19 }
  0xa0   :  { %774 = vmatpush3.msra.mxu1 %v928_v23  ;;  %749 = vmatpush3.msra.mxu0 %v915_v19 }
  0xa1   :  { %776 = vmatmul.mubr.f32.vlgmr.msra.gmra.mxu1 %v144_v60  ;;  %795 = vmatprep.subr.mxu1 %v896_v8 }
  0xa2   :  { %750 = vmatprep.subr.mxu0 %v918_v20  ;;  %796 = vmatpush3.msra.mxu1 %v896_v8 }
  0xa3   :  { %809 = vmatprep.mubr.msk.f32.mxu1 %vm49_vm1, %v648_v50  ;;  %751 = vmatpush3.msra.mxu0 %v918_v20 }
  0xa4   :  { %797 = vmatprep.subr.mxu1 %v898_v9  ;;  %752 = vmatprep.subr.mxu0 %v922_v21 }
  0xa5   :  { %798 = vmatpush3.msra.mxu1 %v898_v9  ;;  %753 = vmatpush3.msra.mxu0 %v922_v21 }
  0xa6   :  { %799 = vmatprep.subr.mxu1 %v900_v10  ;;  %754 = vmatprep.subr.mxu0 %v926_v22 }
  0xa7   :  { %800 = vmatpush3.msra.mxu1 %v900_v10  ;;  %755 = vmatpush3.msra.mxu0 %v926_v22 }
  0xa8   :  { %801 = vmatprep.subr.mxu1 %v902_v11  ;;  %756 = vmatprep.subr.mxu0 %v954_v32 }
  0xa9   :  { %802 = vmatpush3.msra.mxu1 %v902_v11  ;;  %757 = vmatpush3.msra.mxu0 %v954_v32 }
  0xaa   :  { %803 = vmatprep.subr.mxu1 %v904_v14  ;;  %759 = vmatmul.mubr.f32.vlgmr.msra.gmra.mxu0 %v143_v57 }
  0xab   :  { %778 = vmatprep.subr.mxu0 %v931_v24  ;;  %804 = vmatpush3.msra.mxu1 %v904_v14 }
  0xac   :  { %779 = vmatpush3.msra.mxu0 %v931_v24  ;;  %792 = vmatprep.mubr.msk.f32.mxu0 %vm49_vm1, %v648_v50 }
  0xad   :  { %805 = vmatprep.subr.mxu1 %v906_v15  ;;  %780 = vmatprep.subr.mxu0 %v934_v25 }
  0xae   :  { %806 = vmatpush3.msra.mxu1 %v906_v15  ;;  %781 = vmatpush3.msra.mxu0 %v934_v25 }
  0xaf   :  { %807 = vmatprep.subr.mxu1 %v928_v23  ;;  %782 = vmatprep.subr.mxu0 %v937_v26 }
  0xb0   :  { %808 = vmatpush3.msra.mxu1 %v928_v23  ;;  %783 = vmatpush3.msra.mxu0 %v937_v26 }
  0xb1   :  { %810 = vmatmul.mubr.msk.f32.vlgmr.msra.gmra.mxu1 %vm49_vm1, %v984_v54  ;;  %784 = vmatprep.subr.mxu0 %v940_v27 }
  0xb2   :  { %785 = vmatpush3.msra.mxu0 %v940_v27 }
  0xb3   :  { %786 = vmatprep.subr.mxu0 %v944_v28 }
  0xb4   :  { %787 = vmatpush3.msra.mxu0 %v944_v28 }
  0xb5   :  { %788 = vmatprep.subr.mxu0 %v961_v36 }
  0xb6   :  { %789 = vmatpush3.msra.mxu0 %v961_v36 }
  0xb7   :  { %790 = vmatprep.subr.mxu0 %v968_v39 }
  0xb8   :  { %791 = vmatpush3.msra.mxu0 %v968_v39 }
  0xb9   :  { %793 = vmatmul.mubr.msk.f32.vlgmr.msra.gmra.mxu0 %vm49_vm1, %v984_v54 }
 0x152   :  { %v743_v0 = vpop.f32.mrf.mxu1 }
 0x154   :  { %v254_v3 = vpop.f32.mrf.mxu1 }
 0x15b   :  { %v726_v63 = vpop.f32.mrf.mxu0 }
 0x15c   :  { %v261_v4 = vadd.f32 %v743_v0, %v726_v63 }
 0x15d   :  { %v138_v1 = vpop.f32.mrf.mxu0 }
 0x15e   :  { %v255_v7 = vadd.f32 %v254_v3, %v138_v1 }
 0x161   :  { %v777_v5 = vpop.f32.mrf.mxu1 }
 0x163   :  { %v433_v10 = vpop.f32.mrf.mxu1 }
 0x16a   :  { %v760_v2 = vpop.f32.mrf.mxu0 }
 0x16b   :  { %v354_v8 = vadd.f32 %v760_v2, %v261_v4 }
 0x16c   :  { %v346_v6 = vpop.f32.mrf.mxu0 }
 0x16d   :  { %v347_v9 = vadd.f32 %v346_v6, %v255_v7  ;;  %v442_v11 = vadd.f32 %v777_v5, %v354_v8 }
 0x16f   :  { %v434_v15 = vadd.f32 %v433_v10, %v347_v9 }
 0x171   :  { %v811_v12 = vpop.f32.mrf.mxu1 }
 0x173   :  { %v617_v19 = vpop.f32.mrf.mxu1 }
 0x179   :  { %v794_v13 = vpop.f32.mrf.mxu0 }
 0x17a   :  { %v540_v14 = vadd.f32 %v794_v13, %v442_v11 }
 0x17b   :  { %v533_v16 = vpop.f32.mrf.mxu0 }
 0x17c   :  { %v624_v17 = vadd.f32 %v811_v12, %v540_v14  ;;  %v534_v18 = vadd.f32 %v533_v16, %v434_v15 }
 0x17e   :  { %v628_v20 = vmul.f32 11.313708, %v624_v17  ;;  %v618_v21 = vadd.f32 %v617_v19, %v534_v18 }
 0x180   :  { %630 = vst [vmem:[#allocation5 + $0x8] sm:$0xff] %v628_v20  ;;  %v627_v22 = vmul.f32 11.313708, %v618_v21 }
 0x182   :  { %629 = vst [vmem:[#allocation5] sm:$0xff] %v627_v22 }
 0x183   :  { %850 = shalt.err (!%p847_p9)
}
 0x184   :  { %642 = dma.vmem_to_hbm [thread:$0]  %s637_s1, 256, %s1058_s2, [#allocation4], %s864_s12, %s864_s12, %s865_s13  }
 0x185   :  { %861 = dma.done.wait [#allocation4], 256  }
 0x186   :  { %862 = vsyncadd [#allocation4], 4294967040 }
 0x187   :  { %646 = vsyncpa [#allocation3], 1 }
 0x188   :  { %647 = vsyncpa [#allocation4], 1 }

</bundles_post_ra>
